<compile_context>
chip_gen: v6e
topology: v6e:2x2x1
jax: 0.10.0
libtpu: 0.0.40
codegen_flags: <defaults>
</compile_context>

<pallas_src>
import functools

import jax
import jax.numpy as jnp
from jax.experimental import pallas as pl
from jax.experimental.pallas import tpu as pltpu


LANE = 128                              # lane padding for feature dims
_RESIDENT_XW_BYTES = 12 * 1024 * 1024   # budget for keeping XW resident in VMEM


def _round_up(x, m):
    return ((x + m - 1) // m) * m


def _choose_tiles(n):
    """Pick (n_pad, TM, TK) — big tiles for big graphs, single tile for small."""
    n_pad = _round_up(n, 256)
    if n_pad <= 512:
        return n_pad, n_pad, n_pad
    n_pad = _round_up(n, 512)
    return n_pad, 512, 512


# --------------------------- projection kernel ------------------------------

def _proj_kernel(x_ref, w_ref, o_ref):
    """o = X @ W for one row tile; bf16 operands, f32 MXU accumulation, bf16 out."""
    o_ref[...] = jnp.dot(
        x_ref[...], w_ref[...], preferred_element_type=jnp.float32
    ).astype(o_ref.dtype)


def project(x_bf16, w_bf16, *, tm):
    """x: [N_pad, F_in_pad] bf16, w: [F_in_pad, F_out_pad] bf16 -> bf16 XW."""
    n_pad, f_in = x_bf16.shape
    f_out = w_bf16.shape[1]
    return pl.pallas_call(
        _proj_kernel,
        out_shape=jax.ShapeDtypeStruct((n_pad, f_out), jnp.bfloat16),
        grid_spec=pltpu.PrefetchScalarGridSpec(
            num_scalar_prefetch=0,
            grid=(n_pad // tm,),
            in_specs=[
                pl.BlockSpec((tm, f_in), lambda i: (i, 0)),
                pl.BlockSpec((f_in, f_out), lambda i: (0, 0)),  # grid-invariant
            ],
            out_specs=pl.BlockSpec((tm, f_out), lambda i: (i, 0)),
        ),
        compiler_params=pltpu.CompilerParams(
            dimension_semantics=("parallel",)),
    )(x_bf16, w_bf16)


# --------------------------- aggregation kernel -----------------------------

def _agg_kernel(a_ref, xw_ref, b_ref, o_ref, acc_ref, *,
                apply_relu, xw_resident, tk):
    """acc = bias; acc += A_hat[i,k] @ XW[k]; fused ReLU epilogue on last k."""
    k = pl.program_id(1)

    @pl.when(k == 0)
    def _():
        # Bias folded into the accumulator init (saves an epilogue VALU add).
        acc_ref[...] = jnp.broadcast_to(b_ref[...], acc_ref.shape)

    if xw_resident:
        start = pl.multiple_of(k * tk, tk)
        xw = xw_ref[pl.ds(start, tk), :]        # slice the resident XW slab
    else:
        xw = xw_ref[...]                        # streamed (TK, F_out) tile

    acc_ref[...] += jnp.dot(
        a_ref[...], xw, preferred_element_type=jnp.float32)

    @pl.when(k == pl.num_programs(1) - 1)
    def _():
        h = acc_ref[...]                        # epilogue stays f32 (v5e-safe)
        if apply_relu:
            h = jnp.maximum(h, 0.0)
        o_ref[...] = h.astype(o_ref.dtype)


def aggregate(a_hat_bf16, xw_bf16, b, *, apply_relu, out_dtype, tm, tk):
    """a_hat: [N_pad, N_pad] bf16, xw: [N_pad, F_out_pad] bf16, b: [F_out_pad]."""
    n_pad = a_hat_bf16.shape[0]
    f_out = xw_bf16.shape[1]
    b2d = b.reshape(1, f_out).astype(jnp.float32)

    # Keep XW resident in VMEM if it comfortably fits (x2 headroom for the
    # pipeline's buffering); otherwise stream (TK, F_out) tiles per k-step.
    xw_resident = (n_pad * f_out * 2) * 2 <= _RESIDENT_XW_BYTES
    if xw_resident:
        xw_spec = pl.BlockSpec((n_pad, f_out), lambda i, k: (0, 0))
    else:
        xw_spec = pl.BlockSpec((tk, f_out), lambda i, k: (k, 0))

    kernel = functools.partial(
        _agg_kernel, apply_relu=apply_relu, xw_resident=xw_resident, tk=tk)

    return pl.pallas_call(
        kernel,
        out_shape=jax.ShapeDtypeStruct((n_pad, f_out), out_dtype),
        grid_spec=pltpu.PrefetchScalarGridSpec(
            num_scalar_prefetch=0,
            grid=(n_pad // tm, n_pad // tk),      # (dst rows, src reduction)
            in_specs=[
                pl.BlockSpec((tm, tk), lambda i, k: (i, k)),
                xw_spec,
                pl.BlockSpec((1, f_out), lambda i, k: (0, 0)),
            ],
            out_specs=pl.BlockSpec((tm, f_out), lambda i, k: (i, 0)),
            scratch_shapes=[pltpu.VMEM((tm, f_out), jnp.float32)],
        ),
        compiler_params=pltpu.CompilerParams(
            dimension_semantics=("parallel", "arbitrary")),
    )(a_hat_bf16, xw_bf16, b2d)


# ------------------------------ Glue / model --------------------------------

def normalize_adjacency(adj):
    """A_hat = D_dst^{-1/2} A D_src^{-1/2}, degrees clamped to >= 1."""
    adj = adj.astype(jnp.float32)
    out_deg = jnp.maximum(jnp.sum(adj, axis=0), 1.0)  # per src node
    in_deg = jnp.maximum(jnp.sum(adj, axis=1), 1.0)   # per dst node
    src_norm = out_deg ** -0.5
    dst_norm = in_deg ** -0.5
    return dst_norm[:, None] * adj * src_norm[None, :]


def init_gcn_params(key, in_size, hid_size, out_size, num_layers):
    """Xavier-uniform weights, zero biases (DGL GraphConv default init)."""
    sizes = []
    for i in range(num_layers):
        if i == 0:
            sizes.append((in_size, hid_size))
        elif i == num_layers - 1:
            sizes.append((hid_size, out_size))
        else:
            sizes.append((hid_size, hid_size))
    params = []
    for (fin, fout) in sizes:
        key, wk = jax.random.split(key)
        limit = (6.0 / (fin + fout)) ** 0.5
        w = jax.random.uniform(wk, (fin, fout), jnp.float32, -limit, limit)
        b = jnp.zeros((fout,), jnp.float32)
        params.append((w, b))
    return params


def gcn_forward(adj, features, params):
    """Full GCN forward (eval mode: dropout == identity)."""
    n, f_in = features.shape
    out_size = params[-1][0].shape[1]
    n_pad, tm, tk = _choose_tiles(n)

    # Normalize once, cast to bf16 once, pad once; reused by every layer.
    a_hat = normalize_adjacency(adj)
    a_hat = jnp.pad(a_hat, ((0, n_pad - n), (0, n_pad - n))).astype(jnp.bfloat16)

    f_in_pad = _round_up(f_in, LANE)
    h = jnp.pad(features.astype(jnp.float32),
                ((0, n_pad - n), (0, f_in_pad - f_in))).astype(jnp.bfloat16)

    n_layers = len(params)
    for i, (w, b) in enumerate(params):
        fin, fout = w.shape
        fin_pad = _round_up(fin, LANE)
        fout_pad = _round_up(fout, LANE)
        w_pad = jnp.pad(w, ((0, fin_pad - fin),
                            (0, fout_pad - fout))).astype(jnp.bfloat16)
        b_pad = jnp.pad(b, (0, fout_pad - fout))
        last = (i == n_layers - 1)

        xw = project(h, w_pad, tm=tm)                    # bf16 [N_pad, Fo_pad]
        h = aggregate(a_hat, xw, b_pad,
                      apply_relu=not last,
                      out_dtype=jnp.float32 if last else jnp.bfloat16,
                      tm=tm, tk=tk)                      # bf16 (hidden) / f32 (last)
    return h[:n, :out_size]


# ---------------------------------- Main -------------------------------------

if __name__ == "__main__":
    N = 16
    IN_SIZE = 8
    HID_SIZE = 32
    OUT_SIZE = 8
    NUM_LAYERS = 3

    key = jax.random.PRNGKey(0)
    k_adj, k_feat, k_par = jax.random.split(key, 3)

    # Random sparse-ish directed graph as a dense adjacency matrix.
    adj = (jax.random.uniform(k_adj, (N, N)) < 0.25).astype(jnp.float32)
    features = jax.random.normal(k_feat, (N, IN_SIZE), jnp.float32)

    params = init_gcn_params(k_par, IN_SIZE, HID_SIZE, OUT_SIZE, NUM_LAYERS)

    out = gcn_forward(adj, features, params)
    out = jax.block_until_ready(out)

    # Pure-JAX f32 reference (bf16 A_hat/XW/h in the kernel => loose tolerance).
    a_hat_ref = normalize_adjacency(adj)
    h_ref = features.astype(jnp.float32)
    for i, (w, b) in enumerate(params):
        h_ref = a_hat_ref @ (h_ref @ w) + b[None, :]
        if i != NUM_LAYERS - 1:
            h_ref = jnp.maximum(h_ref, 0.0)

    assert out.shape == (N, OUT_SIZE)
    assert jnp.allclose(out, h_ref, atol=5e-2, rtol=5e-2), (
        float(jnp.max(jnp.abs(out - h_ref))))

    print("KERNEL_OK")
</pallas_src>

<mosaic_0001>
module attributes {stable_mosaic.version = 11 : i64} {
  func.func @_proj_kernel(%arg0: i32, %arg1: memref<256x128xbf16, #tpu.memory_space<vmem>>, %arg2: memref<128x128xbf16, #tpu.memory_space<vmem>>, %arg3: memref<256x128xbf16, #tpu.memory_space<vmem>>) attributes {dimension_semantics = [#tpu.dimension_semantics<parallel>], iteration_bounds = array<i64: 1>, scalar_prefetch = 0 : i64, scratch_operands = 0 : i64, tpu.core_type = #tpu.core_type<tc>, window_params = [{transform_indices = @transform_0, window_bounds = array<i64: 256, 128>}, {pipeline_mode = #tpu.pipeline_mode<synchronous>, transform_indices = @transform_1, window_bounds = array<i64: 128, 128>}, {transform_indices = @transform_2, window_bounds = array<i64: 256, 128>}]} {
    %c0 = arith.constant 0 : index
    %c0_0 = arith.constant 0 : index
    %0 = vector.load %arg1[%c0, %c0_0] : memref<256x128xbf16, #tpu.memory_space<vmem>>, vector<256x128xbf16>
    %c0_1 = arith.constant 0 : index
    %c0_2 = arith.constant 0 : index
    %1 = vector.load %arg2[%c0_1, %c0_2] : memref<128x128xbf16, #tpu.memory_space<vmem>>, vector<128x128xbf16>
    %cst = arith.constant dense<0.000000e+00> : vector<256x128xf32>
    %2 = tpu.matmul %0, %1, %cst {dimension_numbers = #tpu.dot_dimension_numbers<[1], [0], [0], [1], [0, 0, 1, 1], [], []>} : vector<256x128xbf16>, vector<128x128xbf16>, vector<256x128xf32> -> vector<256x128xf32>
    %3 = arith.truncf %2 : vector<256x128xf32> to vector<256x128xbf16>
    %c0_3 = arith.constant 0 : index
    %c0_4 = arith.constant 0 : index
    %4 = vector.load %arg3[%c0_3, %c0_4] : memref<256x128xbf16, #tpu.memory_space<vmem>>, vector<256x128xbf16>
    tpu.vector_store %arg3[%c0_3, %c0_4], %3 {strides = array<i32>} : memref<256x128xbf16, #tpu.memory_space<vmem>>, vector<256x128xbf16>,
    return
  }
  func.func @transform_0(%arg0: i32) -> (i32, i32) {
    %c0_i32 = arith.constant 0 : i32
    %c0_i32_0 = arith.constant 0 : i32
    return %arg0, %c0_i32 : i32, i32
  }
  func.func @transform_1(%arg0: i32) -> (i32, i32) {
    %c0_i32 = arith.constant 0 : i32
    %c0_i32_0 = arith.constant 0 : i32
    %c0_i32_1 = arith.constant 0 : i32
    return %c0_i32, %c0_i32_0 : i32, i32
  }
  func.func @transform_2(%arg0: i32) -> (i32, i32) {
    %c0_i32 = arith.constant 0 : i32
    %c0_i32_0 = arith.constant 0 : i32
    return %arg0, %c0_i32 : i32, i32
  }
}

</mosaic_0001>

<bundles_post_ra>
// kernel: tpu_custom_call.1
= control target key start
LH: loop header
LB: loop body
LE: loop exit
PB: predicated region body
PF: predicated region fallthrough
CT: control target
= control target key end

     0   :  { %7 = vsyncpa [#allocation3], 0  ;;  %s976_s0 = inlined_call_operand.hbm [shape: bf16[256,128], index: 0, kind: input, shape index: {}]   ;;  %s977_s1 = inlined_call_operand.hbm [shape: bf16[128,128], index: 1, kind: input, shape index: {}]   ;;  %s978_s2 = inlined_call_operand.hbm [shape: bf16[256,128], index: 2, kind: output, shape index: {}]  }
   0x1   :  { %8 = vsyncpa [#allocation6], 0 }
   0x2   :  { %9 = vsyncpa [#allocation4], 0  ;;  %s938_s9 = smov [#allocation2]  }
   0x3   :  { %s15_s10 = sshll.u32 %s938_s9, 4  ;;  %s16_s10 = int_to_ptr.vmem [resolvable:$true] %s15_s10 }
   0x4   :  { %s880_s11 = scalar_lea.vmem %s16_s10, 2048  ;;  %p885_p1 = scmp.lt.s32.totalorder %s16_s10, %s16_s10 }
   0x5   :  { %p881_p0 = scmp.ne.s32.totalorder %s16_s10, %s880_s11  ;;  %p886_p2 = scmp.lt.s32.totalorder %s880_s11, %s880_s11 }
   0x7   :  { %p887_p3 = por %p886_p2, %p885_p1 }
   0x9   :  { %p888_p4 = pnand %p887_p3, %p881_p0 }
   0xb   :  { %891 = shalt.err (!%p888_p4)
}
   0xc   :  { %s939_s12 = smov 64   ;;  %s940_s13 = smov 4  }
   0xd   :  { %21 = dma.hbm_to_vmem [thread:$0]  %s976_s0, 2048, %s16_s10, [#allocation3], %s939_s12, %s939_s12, %s940_s13  }
   0xe   :  { %s941_s16 = smov [#allocation5]  }
   0xf   :  { %s27_s17 = sshll.u32 %s941_s16, 4  ;;  %s28_s17 = int_to_ptr.vmem [resolvable:$true] %s27_s17 }
  0x10   :  { %s900_s18 = scalar_lea.vmem %s28_s17, 1024  ;;  %p905_p6 = scmp.lt.s32.totalorder %s28_s17, %s28_s17 }
  0x11   :  { %p901_p5 = scmp.ne.s32.totalorder %s28_s17, %s900_s18  ;;  %p906_p7 = scmp.lt.s32.totalorder %s900_s18, %s900_s18 }
  0x13   :  { %p907_p8 = por %p906_p7, %p905_p6 }
  0x15   :  { %p908_p9 = pnand %p907_p8, %p901_p5 }
  0x17   :  { %911 = shalt.err (!%p908_p9)
}
  0x18   :  { %33 = dma.hbm_to_vmem [thread:$0]  %s977_s1, 1024, %s28_s17, [#allocation6], %s939_s12, %s939_s12, %s940_s13  }
  0x19   :  { %932 = dma.done.wait [#allocation3], 2048  }
  0x1a   :  { %933 = vsyncadd [#allocation3], 4294965248 }
  0x1b   :  { %934 = dma.done.wait [#allocation6], 1024  }
  0x1c   :  { %935 = vsyncadd [#allocation6], 4294966272  ;;  %v848_v0 = vld [vmem:[#allocation5 + $0x38] sm:$0xff]   ;;  %v849_v1 = vld [vmem:[#allocation5 + $0x30] sm:$0xff]   ;;  %s942_s0 = smov [#allocation7]  }
  0x1d   :  { %779 = vmatprep.subr.bf16.mxu0 %v848_v0  ;;  %827 = vmatprep.subr.bf16.mxu1 %v848_v0  ;;  %v850_v2 = vld [vmem:[#allocation5 + $0x28] sm:$0xff]   ;;  %v851_v3 = vld [vmem:[#allocation5 + $0x20] sm:$0xff]   ;;  %v852_v6 = vld [vmem:[#allocation5 + $0x18] sm:$0xff]   ;;  %s559_s1 = sshll.u32 %s942_s0, 4  ;;  %s560_s1 = int_to_ptr.vmem [resolvable:$true] %s559_s1 }
  0x1e   :  { %780 = vmatpush3.bf16.msra.mxu0 %v848_v0  ;;  %835 = vmatpush3.bf16.msra.mxu1 %v848_v0  ;;  %v856_v4 = vld [vmem:[#allocation2] sm:$0xff]   ;;  %v853_v7 = vld [vmem:[#allocation5 + $0x10] sm:$0xff]   ;;  %v854_v8 = vld [vmem:[#allocation5 + $0x8] sm:$0xff]   ;;  %s912_s21 = scalar_lea.vmem %s560_s1, 2048  ;;  %p917_p11 = scmp.lt.s32.totalorder %s560_s1, %s560_s1 }
  0x1f   :  { %781 = vmatprep.subr.bf16.mxu0 %v849_v1  ;;  %828 = vmatprep.subr.bf16.mxu1 %v849_v1  ;;  %v857_v5 = vld [vmem:[#allocation2 + $0x40] sm:$0xff]   ;;  %v858_v10 = vld [vmem:[#allocation2 + $0x8] sm:$0xff]   ;;  %v860_v12 = vld [vmem:[#allocation2 + $0x10] sm:$0xff]   ;;  %p913_p10 = scmp.ne.s32.totalorder %s560_s1, %s912_s21  ;;  %p918_p12 = scmp.lt.s32.totalorder %s912_s21, %s912_s21 }
  0x20   :  { %795 = vmatprep.mubr.bf16.mxu0 %v856_v4  ;;  %811 = vmatprep.mubr.bf16.mxu1 %v857_v5  ;;  %v855_v9 = vld [vmem:[#allocation5] sm:$0xff]   ;;  %v859_v11 = vld [vmem:[#allocation2 + $0x48] sm:$0xff]   ;;  %v861_v13 = vld [vmem:[#allocation2 + $0x50] sm:$0xff]  }
  0x21   :  { %v862_v14 = vld [vmem:[#allocation2 + $0x18] sm:$0xff]   ;;  %v864_v16 = vld [vmem:[#allocation2 + $0x20] sm:$0xff]   ;;  %v866_v18 = vld [vmem:[#allocation2 + $0x28] sm:$0xff]   ;;  %p919_p13 = por %p918_p12, %p917_p11 }
  0x22   :  { %782 = vmatpush3.bf16.msra.mxu0 %v849_v1  ;;  %836 = vmatpush3.bf16.msra.mxu1 %v849_v1  ;;  %v863_v15 = vld [vmem:[#allocation2 + $0x58] sm:$0xff]   ;;  %v865_v17 = vld [vmem:[#allocation2 + $0x60] sm:$0xff]   ;;  %v867_v19 = vld [vmem:[#allocation2 + $0x68] sm:$0xff]  }
  0x23   :  { %783 = vmatprep.subr.bf16.mxu0 %v850_v2  ;;  %829 = vmatprep.subr.bf16.mxu1 %v850_v2  ;;  %v868_v20 = vld [vmem:[#allocation2 + $0x30] sm:$0xff]   ;;  %v870_v22 = vld [vmem:[#allocation2 + $0x38] sm:$0xff]   ;;  %p920_p0 = pnand %p919_p13, %p913_p10 }
  0x24   :  { %v869_v21 = vld [vmem:[#allocation2 + $0x70] sm:$0xff]   ;;  %v871_v23 = vld [vmem:[#allocation2 + $0x78] sm:$0xff]  }
  0x26   :  { %784 = vmatpush3.bf16.msra.mxu0 %v850_v2  ;;  %837 = vmatpush3.bf16.msra.mxu1 %v850_v2 }
  0x27   :  { %785 = vmatprep.subr.bf16.mxu0 %v851_v3  ;;  %830 = vmatprep.subr.bf16.mxu1 %v851_v3 }
  0x2a   :  { %786 = vmatpush3.bf16.msra.mxu0 %v851_v3  ;;  %838 = vmatpush3.bf16.msra.mxu1 %v851_v3 }
  0x2b   :  { %787 = vmatprep.subr.bf16.mxu0 %v852_v6  ;;  %831 = vmatprep.subr.bf16.mxu1 %v852_v6 }
  0x2e   :  { %788 = vmatpush3.bf16.msra.mxu0 %v852_v6  ;;  %839 = vmatpush3.bf16.msra.mxu1 %v852_v6 }
  0x2f   :  { %789 = vmatprep.subr.bf16.mxu0 %v853_v7  ;;  %832 = vmatprep.subr.bf16.mxu1 %v853_v7 }
  0x32   :  { %790 = vmatpush3.bf16.msra.mxu0 %v853_v7  ;;  %840 = vmatpush3.bf16.msra.mxu1 %v853_v7 }
  0x33   :  { %791 = vmatprep.subr.bf16.mxu0 %v854_v8  ;;  %833 = vmatprep.subr.bf16.mxu1 %v854_v8 }
  0x36   :  { %792 = vmatpush3.bf16.msra.mxu0 %v854_v8  ;;  %841 = vmatpush3.bf16.msra.mxu1 %v854_v8 }
  0x37   :  { %793 = vmatprep.subr.bf16.mxu0 %v855_v9  ;;  %834 = vmatprep.subr.bf16.mxu1 %v855_v9 }
  0x3a   :  { %794 = vmatpush3.bf16.msra.mxu0 %v855_v9  ;;  %842 = vmatpush3.bf16.msra.mxu1 %v855_v9 }
  0x3d   :  { %796 = vmatmul.mubr.bf16.vlgmr.msra.gmra.mxu0 %v858_v10  ;;  %812 = vmatmul.mubr.bf16.vlgmr.msra.gmra.mxu1 %v859_v11 }
  0x3e   :  { %799 = vmatprep.mubr.bf16.mxu0 %v860_v12  ;;  %815 = vmatprep.mubr.bf16.mxu1 %v861_v13 }
  0x45   :  { %800 = vmatmul.mubr.bf16.gmra.mxu0 %v862_v14  ;;  %816 = vmatmul.mubr.bf16.gmra.mxu1 %v863_v15 }
  0x46   :  { %803 = vmatprep.mubr.bf16.mxu0 %v864_v16  ;;  %819 = vmatprep.mubr.bf16.mxu1 %v865_v17 }
  0x4d   :  { %804 = vmatmul.mubr.bf16.gmra.mxu0 %v866_v18  ;;  %820 = vmatmul.mubr.bf16.gmra.mxu1 %v867_v19 }
  0x4e   :  { %807 = vmatprep.mubr.bf16.mxu0 %v868_v20  ;;  %823 = vmatprep.mubr.bf16.mxu1 %v869_v21 }
  0x55   :  { %808 = vmatmul.mubr.bf16.gmra.mxu0 %v870_v22  ;;  %824 = vmatmul.mubr.bf16.gmra.mxu1 %v871_v23 }
  0xfd   :  { %v797_v24 = vpop.f32.mrf.mxu0  ;;  %v813_v25 = vpop.f32.mrf.mxu1 }
  0xff   :  { %v267_v26 = vpop.f32.mrf.mxu0  ;;  %v331_v27 = vpop.f32.mrf.mxu1 }
 0x101   :  { %v798_v28 = vpop.f32.mrf.mxu0  ;;  %v814_v29 = vpop.f32.mrf.mxu1 }
 0x102   :  { %v668_v30 = vpack.c.bf16 %v798_v28, %v797_v24  ;;  %v708_v31 = vpack.c.bf16 %v814_v29, %v813_v25 }
 0x103   :  { %v270_v32 = vpop.f32.mrf.mxu0  ;;  %v334_v33 = vpop.f32.mrf.mxu1 }
 0x104   :  { %740 = vst [vmem:[#allocation7 + $0x8] sm:$0xff] %v668_v30   ;;  %748 = vst [vmem:[#allocation7 + $0x48] sm:$0xff] %v708_v31   ;;  %v663_v34 = vpack.c.bf16 %v270_v32, %v267_v26  ;;  %v703_v35 = vpack.c.bf16 %v334_v33, %v331_v27 }
 0x105   :  { %v801_v36 = vpop.f32.mrf.mxu0  ;;  %v817_v37 = vpop.f32.mrf.mxu1 }
 0x106   :  { %664 = vst [vmem:[#allocation7] sm:$0xff] %v663_v34   ;;  %747 = vst [vmem:[#allocation7 + $0x40] sm:$0xff] %v703_v35  }
 0x107   :  { %v283_v38 = vpop.f32.mrf.mxu0  ;;  %v347_v39 = vpop.f32.mrf.mxu1 }
 0x109   :  { %v802_v40 = vpop.f32.mrf.mxu0  ;;  %v818_v41 = vpop.f32.mrf.mxu1 }
 0x10a   :  { %v678_v42 = vpack.c.bf16 %v802_v40, %v801_v36  ;;  %v718_v43 = vpack.c.bf16 %v818_v41, %v817_v37 }
 0x10b   :  { %v286_v44 = vpop.f32.mrf.mxu0  ;;  %v350_v45 = vpop.f32.mrf.mxu1 }
 0x10c   :  { %742 = vst [vmem:[#allocation7 + $0x18] sm:$0xff] %v678_v42   ;;  %750 = vst [vmem:[#allocation7 + $0x58] sm:$0xff] %v718_v43   ;;  %v673_v46 = vpack.c.bf16 %v286_v44, %v283_v38  ;;  %v713_v47 = vpack.c.bf16 %v350_v45, %v347_v39 }
 0x10d   :  { %v805_v48 = vpop.f32.mrf.mxu0  ;;  %v821_v49 = vpop.f32.mrf.mxu1 }
 0x10e   :  { %741 = vst [vmem:[#allocation7 + $0x10] sm:$0xff] %v673_v46   ;;  %749 = vst [vmem:[#allocation7 + $0x50] sm:$0xff] %v713_v47  }
 0x10f   :  { %v299_v50 = vpop.f32.mrf.mxu0  ;;  %v363_v51 = vpop.f32.mrf.mxu1 }
 0x111   :  { %v806_v52 = vpop.f32.mrf.mxu0  ;;  %v822_v53 = vpop.f32.mrf.mxu1 }
 0x112   :  { %v688_v54 = vpack.c.bf16 %v806_v52, %v805_v48  ;;  %v728_v55 = vpack.c.bf16 %v822_v53, %v821_v49 }
 0x113   :  { %v302_v56 = vpop.f32.mrf.mxu0  ;;  %v366_v57 = vpop.f32.mrf.mxu1 }
 0x114   :  { %744 = vst [vmem:[#allocation7 + $0x28] sm:$0xff] %v688_v54   ;;  %752 = vst [vmem:[#allocation7 + $0x68] sm:$0xff] %v728_v55   ;;  %v683_v58 = vpack.c.bf16 %v302_v56, %v299_v50  ;;  %v723_v59 = vpack.c.bf16 %v366_v57, %v363_v51 }
 0x115   :  { %v809_v60 = vpop.f32.mrf.mxu0  ;;  %v825_v61 = vpop.f32.mrf.mxu1 }
 0x116   :  { %743 = vst [vmem:[#allocation7 + $0x20] sm:$0xff] %v683_v58   ;;  %751 = vst [vmem:[#allocation7 + $0x60] sm:$0xff] %v723_v59  }
 0x117   :  { %v315_v62 = vpop.f32.mrf.mxu0  ;;  %v379_v63 = vpop.f32.mrf.mxu1 }
 0x119   :  { %v810_v0 = vpop.f32.mrf.mxu0  ;;  %v826_v1 = vpop.f32.mrf.mxu1 }
 0x11a   :  { %v698_v2 = vpack.c.bf16 %v810_v0, %v809_v60  ;;  %v738_v3 = vpack.c.bf16 %v826_v1, %v825_v61 }
 0x11b   :  { %v318_v4 = vpop.f32.mrf.mxu0  ;;  %v382_v5 = vpop.f32.mrf.mxu1 }
 0x11c   :  { %746 = vst [vmem:[#allocation7 + $0x38] sm:$0xff] %v698_v2   ;;  %754 = vst [vmem:[#allocation7 + $0x78] sm:$0xff] %v738_v3   ;;  %v693_v6 = vpack.c.bf16 %v318_v4, %v315_v62  ;;  %v733_v7 = vpack.c.bf16 %v382_v5, %v379_v63 }
 0x11e   :  { %745 = vst [vmem:[#allocation7 + $0x30] sm:$0xff] %v693_v6   ;;  %753 = vst [vmem:[#allocation7 + $0x70] sm:$0xff] %v733_v7  }
 0x11f   :  { %923 = shalt.err (!%p920_p0)
}
 0x120   :  { %565 = dma.vmem_to_hbm [thread:$0]  %s560_s1, 2048, %s978_s2, [#allocation4], %s939_s12, %s939_s12, %s940_s13  }
 0x121   :  { %936 = dma.done.wait [#allocation4], 2048  }
 0x122   :  { %937 = vsyncadd [#allocation4], 4294965248 }
 0x123   :  { %569 = vsyncpa [#allocation3], 1 }
 0x124   :  { %570 = vsyncpa [#allocation6], 1 }
 0x125   :  { %571 = vsyncpa [#allocation4], 1 }

</bundles_post_ra>
